<compile_context>
chip_gen: v7x
topology: tpu7x:2x2x1
jax: 0.10.0
libtpu: 0.0.40
codegen_flags: <defaults>
</compile_context>

<pallas_src>
import jax
import jax.numpy as jnp
from jax.experimental import pallas as pl
from jax.experimental.pallas import tpu as pltpu

_LANE = 128
_CPAD = 128  # lane-dense padded class width


def _round_up(x, m):
    return (x + m - 1) // m * m


def _sage_layer1_kernel(a_ref, xk_ref, xi_ref, w1s_ref, w1n_ref, b1_ref,
                        w2_ref, b2_ref, pself_ref, pneigh_ref, acc_ref):
    """Row tile i, contraction tile k over source nodes.

    acc += A[i, k] @ x[k]                       (mean aggregation, f32 accumulator)
    on last k:
      h1        = relu(x[i] @ W1_self + acc @ W1_neigh + b1)
      [ps | pn] = h1 @ [W2_self | W2_neigh]     (layer-2 bias folded into ps)
    """
    k = pl.program_id(1)
    cpad = pself_ref.shape[1]

    @pl.when(k == 0)
    def _():
        acc_ref[...] = jnp.zeros_like(acc_ref)

    acc_ref[...] += jnp.dot(a_ref[...], xk_ref[...],
                            preferred_element_type=jnp.float32)

    @pl.when(k == pl.num_programs(1) - 1)
    def _():
        h1 = jnp.dot(xi_ref[...], w1s_ref[...],
                     preferred_element_type=jnp.float32)
        h1 = h1 + jnp.dot(acc_ref[...].astype(jnp.bfloat16), w1n_ref[...],
                          preferred_element_type=jnp.float32)
        h1 = jnp.maximum(h1 + b1_ref[...], 0.0)                    # bias + ReLU, f32 VPU
        p = jnp.dot(h1.astype(jnp.bfloat16), w2_ref[...],
                    preferred_element_type=jnp.float32)            # [TM, 2*Cpad]
        pself_ref[...] = p[:, :cpad] + b2_ref[...]                 # fold layer-2 bias
        pneigh_ref[...] = p[:, cpad:].astype(jnp.bfloat16)         # feeds MXU in call 2


def _sage_layer2_kernel(a_ref, pnk_ref, psi_ref, out_ref, acc_ref):
    """Row tile i, contraction tile k:  out = p_self + A @ p_neigh."""
    k = pl.program_id(1)

    @pl.when(k == 0)
    def _():
        acc_ref[...] = jnp.zeros_like(acc_ref)

    acc_ref[...] += jnp.dot(a_ref[...], pnk_ref[...],
                            preferred_element_type=jnp.float32)

    @pl.when(k == pl.num_programs(1) - 1)
    def _():
        out_ref[...] = psi_ref[...] + acc_ref[...]


def graphsage_forward(a_mean, x, params, *, tm=None, tk=None):
    """Fused 2-layer GraphSAGE (mean aggregation) via two row+contraction-tiled calls."""
    n, in_feats = x.shape
    h_feat = params["w1_self"].shape[1]
    num_classes = params["w2_self"].shape[1]
    assert num_classes <= _CPAD

    # Lane-dense padding of every MXU dimension.
    f_pad = _round_up(in_feats, _LANE)
    h_pad = _round_up(h_feat, _LANE)
    n_pad = _round_up(n, _LANE)

    # Tile selection: large row tiles (128/256) and larger contraction tiles.
    if tm is None:
        tm = 256 if n_pad % 256 == 0 else 128
    if tk is None:
        tk = 512 if n_pad % 512 == 0 else (256 if n_pad % 256 == 0 else 128)
    tm = min(tm, n_pad)
    tk = min(tk, n_pad)
    assert n_pad % tm == 0 and n_pad % tk == 0
    assert tm % 8 == 0 and tk % _LANE == 0

    # Wrapper-side prep (done once): zero-pad, stack layer-2 weights, cast MXU
    # operands to bf16.  Zero padding is exact: padded rows/cols contribute 0.
    a_p = jnp.zeros((n_pad, n_pad), jnp.float32).at[:n, :n].set(
        a_mean).astype(jnp.bfloat16)
    x_p = jnp.zeros((n_pad, f_pad), jnp.float32).at[:n, :in_feats].set(
        x).astype(jnp.bfloat16)

    w1s = jnp.zeros((f_pad, h_pad), jnp.float32).at[:in_feats, :h_feat].set(
        params["w1_self"]).astype(jnp.bfloat16)
    w1n = jnp.zeros((f_pad, h_pad), jnp.float32).at[:in_feats, :h_feat].set(
        params["w1_neigh"]).astype(jnp.bfloat16)
    b1 = jnp.zeros((1, h_pad), jnp.float32).at[:, :h_feat].set(params["b1"])

    w2s = jnp.zeros((h_pad, _CPAD), jnp.float32).at[:h_feat, :num_classes].set(
        params["w2_self"])
    w2n = jnp.zeros((h_pad, _CPAD), jnp.float32).at[:h_feat, :num_classes].set(
        params["w2_neigh"])
    w2 = jnp.concatenate([w2s, w2n], axis=1).astype(jnp.bfloat16)     # [Hpad, 2*Cpad]
    b2 = jnp.zeros((1, _CPAD), jnp.float32).at[:, :num_classes].set(params["b2"])

    grid = (n_pad // tm, n_pad // tk)
    cparams = pltpu.CompilerParams(
        dimension_semantics=("parallel", "arbitrary"),
        vmem_limit_bytes=48 * 1024 * 1024,
    )

    # ---- call 1: layer 1 + commuted layer-2 projection ----
    p_self, p_neigh = pl.pallas_call(
        _sage_layer1_kernel,
        out_shape=(jax.ShapeDtypeStruct((n_pad, _CPAD), jnp.float32),   # p_self (+ b2)
                   jax.ShapeDtypeStruct((n_pad, _CPAD), jnp.bfloat16)),  # p_neigh
        grid=grid,
        in_specs=[
            pl.BlockSpec((tm, tk), lambda i, k: (i, k)),            # A tile (streamed)
            pl.BlockSpec((tk, f_pad), lambda i, k: (k, 0)),         # x, contraction stream
            pl.BlockSpec((tm, f_pad), lambda i, k: (i, 0)),         # x, this tile's own rows
            pl.BlockSpec((f_pad, h_pad), lambda i, k: (0, 0)),      # W1_self
            pl.BlockSpec((f_pad, h_pad), lambda i, k: (0, 0)),      # W1_neigh
            pl.BlockSpec((1, h_pad), lambda i, k: (0, 0)),          # b1
            pl.BlockSpec((h_pad, 2 * _CPAD), lambda i, k: (0, 0)),  # [W2_self | W2_neigh]
            pl.BlockSpec((1, _CPAD), lambda i, k: (0, 0)),          # b2 (padded)
        ],
        out_specs=(pl.BlockSpec((tm, _CPAD), lambda i, k: (i, 0)),
                   pl.BlockSpec((tm, _CPAD), lambda i, k: (i, 0))),
        scratch_shapes=[pltpu.VMEM((tm, f_pad), jnp.float32)],      # f32 aggregation acc
        compiler_params=cparams,
    )(a_p, x_p, x_p, w1s, w1n, b1, w2, b2)

    # ---- call 2: layer-2 aggregation + combine ----
    out_pad = pl.pallas_call(
        _sage_layer2_kernel,
        out_shape=jax.ShapeDtypeStruct((n_pad, _CPAD), jnp.float32),
        grid=grid,
        in_specs=[
            pl.BlockSpec((tm, tk), lambda i, k: (i, k)),            # A tile
            pl.BlockSpec((tk, _CPAD), lambda i, k: (k, 0)),         # p_neigh, contraction stream
            pl.BlockSpec((tm, _CPAD), lambda i, k: (i, 0)),         # p_self row tile
        ],
        out_specs=pl.BlockSpec((tm, _CPAD), lambda i, k: (i, 0)),
        scratch_shapes=[pltpu.VMEM((tm, _CPAD), jnp.float32)],
        compiler_params=cparams,
    )(a_p, p_neigh, p_self)

    return out_pad[:n, :num_classes]


def build_mean_adjacency(src, dst, num_nodes):
    """Dense mean-aggregation matrix: A[i, j] = 1/in_deg(i) for each edge j->i."""
    adj = jnp.zeros((num_nodes, num_nodes), jnp.float32)
    adj = adj.at[dst, src].add(1.0)
    deg = adj.sum(axis=1, keepdims=True)
    return adj / jnp.maximum(deg, 1.0)          # zero in-degree rows -> 0 (DGL behavior)


def init_params(key, in_feats, h_feat, num_classes):
    ks = jax.random.split(key, 6)
    scale = 0.1
    return {
        # weights stored pre-transposed: [F_in, F_out]
        "w1_self":  scale * jax.random.normal(ks[0], (in_feats, h_feat), jnp.float32),
        "w1_neigh": scale * jax.random.normal(ks[1], (in_feats, h_feat), jnp.float32),
        "b1":       scale * jax.random.normal(ks[2], (1, h_feat), jnp.float32),
        "w2_self":  scale * jax.random.normal(ks[3], (h_feat, num_classes), jnp.float32),
        "w2_neigh": scale * jax.random.normal(ks[4], (h_feat, num_classes), jnp.float32),
        "b2":       scale * jax.random.normal(ks[5], (1, num_classes), jnp.float32),
    }


def _reference_forward(a_mean, x, prm):
    """Plain-JAX reference with the same bf16 rounding points as the kernels."""
    bf = lambda t: t.astype(jnp.bfloat16).astype(jnp.float32)
    a, xb = bf(a_mean), bf(x)
    w1s, w1n = bf(prm["w1_self"]), bf(prm["w1_neigh"])
    w2s, w2n = bf(prm["w2_self"]), bf(prm["w2_neigh"])
    h1 = xb @ w1s + bf(a @ xb) @ w1n + prm["b1"]
    h1 = bf(jnp.maximum(h1, 0.0))
    p_self = h1 @ w2s + prm["b2"]
    p_neigh = bf(h1 @ w2n)
    return p_self + a @ p_neigh


if __name__ == "__main__":
    NUM_NODES, IN_FEATS, H_FEAT, NUM_CLASSES = 32, 8, 32, 4

    key = jax.random.PRNGKey(0)
    k_feat, k_param = jax.random.split(key)

    # Deterministic small graph: a ring plus a few skip edges.
    nodes = jnp.arange(NUM_NODES)
    src = jnp.concatenate([nodes, (nodes + 3) % NUM_NODES, (nodes + 7) % NUM_NODES])
    dst = jnp.concatenate([(nodes + 1) % NUM_NODES, nodes, nodes])
    a_mean = build_mean_adjacency(src, dst, NUM_NODES)

    x = jax.random.normal(k_feat, (NUM_NODES, IN_FEATS), jnp.float32)
    params = init_params(k_param, IN_FEATS, H_FEAT, NUM_CLASSES)

    out = graphsage_forward(a_mean, x, params)   # auto tiles (padded N=128 -> 1x1 grid)
    out = jax.block_until_ready(out)

    ref = _reference_forward(a_mean, x, params)
    assert out.shape == (NUM_NODES, NUM_CLASSES)
    err = float(jnp.max(jnp.abs(out - ref)))
    assert jnp.allclose(out, ref, atol=2e-3, rtol=2e-3), f"max abs diff {err}"

    print("KERNEL_OK")
</pallas_src>

<mosaic_0001>
module attributes {stable_mosaic.version = 11 : i64} {
  func.func @_sage_layer1_kernel(%arg0: i32, %arg1: i32, %arg2: memref<128x128xbf16, #tpu.memory_space<vmem>>, %arg3: memref<128x128xbf16, #tpu.memory_space<vmem>>, %arg4: memref<128x128xbf16, #tpu.memory_space<vmem>>, %arg5: memref<128x128xbf16, #tpu.memory_space<vmem>>, %arg6: memref<128x128xbf16, #tpu.memory_space<vmem>>, %arg7: memref<1x128xf32, #tpu.memory_space<vmem>>, %arg8: memref<128x256xbf16, #tpu.memory_space<vmem>>, %arg9: memref<1x128xf32, #tpu.memory_space<vmem>>, %arg10: memref<128x128xf32, #tpu.memory_space<vmem>>, %arg11: memref<128x128xbf16, #tpu.memory_space<vmem>>, %arg12: memref<128x128xf32, #tpu.memory_space<vmem>>) attributes {dimension_semantics = [#tpu.dimension_semantics<parallel>, #tpu.dimension_semantics<arbitrary>], iteration_bounds = array<i64: 1, 1>, scalar_prefetch = 0 : i64, scratch_operands = 1 : i64, tpu.core_type = #tpu.core_type<tc>, window_params = [{transform_indices = @transform_0, window_bounds = array<i64: 128, 128>}, {transform_indices = @transform_1, window_bounds = array<i64: 128, 128>}, {transform_indices = @transform_2, window_bounds = array<i64: 128, 128>}, {pipeline_mode = #tpu.pipeline_mode<synchronous>, transform_indices = @transform_3, window_bounds = array<i64: 128, 128>}, {pipeline_mode = #tpu.pipeline_mode<synchronous>, transform_indices = @transform_4, window_bounds = array<i64: 128, 128>}, {pipeline_mode = #tpu.pipeline_mode<synchronous>, transform_indices = @transform_5, window_bounds = array<i64: 1, 128>}, {pipeline_mode = #tpu.pipeline_mode<synchronous>, transform_indices = @transform_6, window_bounds = array<i64: 128, 256>}, {pipeline_mode = #tpu.pipeline_mode<synchronous>, transform_indices = @transform_7, window_bounds = array<i64: 1, 128>}, {transform_indices = @transform_8, window_bounds = array<i64: 128, 128>}, {transform_indices = @transform_9, window_bounds = array<i64: 128, 128>}]} {
    %c0_i32 = arith.constant 0 : i32
    %0 = arith.cmpi eq, %arg1, %c0_i32 : i32
    %1 = arith.extui %0 : i1 to i32
    %c0_i32_0 = arith.constant 0 : i32
    %2 = arith.cmpi ne, %1, %c0_i32_0 : i32
    scf.if %2 {
      %cst_10 = arith.constant 0.000000e+00 : f32
      %12 = vector.broadcast %cst_10 : f32 to vector<128x128xf32>
      %c0_11 = arith.constant 0 : index
      %c0_12 = arith.constant 0 : index
      %13 = vector.load %arg12[%c0_11, %c0_12] : memref<128x128xf32, #tpu.memory_space<vmem>>, vector<128x128xf32>
      tpu.vector_store %arg12[%c0_11, %c0_12], %12 {strides = array<i32>} : memref<128x128xf32, #tpu.memory_space<vmem>>, vector<128x128xf32>,
    } else {
    }
    %c0 = arith.constant 0 : index
    %c0_1 = arith.constant 0 : index
    %3 = vector.load %arg12[%c0, %c0_1] : memref<128x128xf32, #tpu.memory_space<vmem>>, vector<128x128xf32>
    %c0_2 = arith.constant 0 : index
    %c0_3 = arith.constant 0 : index
    %4 = vector.load %arg2[%c0_2, %c0_3] : memref<128x128xbf16, #tpu.memory_space<vmem>>, vector<128x128xbf16>
    %c0_4 = arith.constant 0 : index
    %c0_5 = arith.constant 0 : index
    %5 = vector.load %arg3[%c0_4, %c0_5] : memref<128x128xbf16, #tpu.memory_space<vmem>>, vector<128x128xbf16>
    %cst = arith.constant dense<0.000000e+00> : vector<128x128xf32>
    %6 = tpu.matmul %4, %5, %cst {dimension_numbers = #tpu.dot_dimension_numbers<[1], [0], [0], [1], [0, 0, 1, 1], [], []>} : vector<128x128xbf16>, vector<128x128xbf16>, vector<128x128xf32> -> vector<128x128xf32>
    %7 = arith.addf %3, %6 : vector<128x128xf32>
    %c0_6 = arith.constant 0 : index
    %c0_7 = arith.constant 0 : index
    %8 = vector.load %arg12[%c0_6, %c0_7] : memref<128x128xf32, #tpu.memory_space<vmem>>, vector<128x128xf32>
    tpu.vector_store %arg12[%c0_6, %c0_7], %7 {strides = array<i32>} : memref<128x128xf32, #tpu.memory_space<vmem>>, vector<128x128xf32>,
    %c0_i32_8 = arith.constant 0 : i32
    %9 = arith.cmpi eq, %arg1, %c0_i32_8 : i32
    %10 = arith.extui %9 : i1 to i32
    %c0_i32_9 = arith.constant 0 : i32
    %11 = arith.cmpi ne, %10, %c0_i32_9 : i32
    scf.if %11 {
      %c0_10 = arith.constant 0 : index
      %c0_11 = arith.constant 0 : index
      %12 = vector.load %arg4[%c0_10, %c0_11] : memref<128x128xbf16, #tpu.memory_space<vmem>>, vector<128x128xbf16>
      %c0_12 = arith.constant 0 : index
      %c0_13 = arith.constant 0 : index
      %13 = vector.load %arg5[%c0_12, %c0_13] : memref<128x128xbf16, #tpu.memory_space<vmem>>, vector<128x128xbf16>
      %cst_14 = arith.constant dense<0.000000e+00> : vector<128x128xf32>
      %14 = tpu.matmul %12, %13, %cst_14 {dimension_numbers = #tpu.dot_dimension_numbers<[1], [0], [0], [1], [0, 0, 1, 1], [], []>} : vector<128x128xbf16>, vector<128x128xbf16>, vector<128x128xf32> -> vector<128x128xf32>
      %c0_15 = arith.constant 0 : index
      %c0_16 = arith.constant 0 : index
      %15 = vector.load %arg12[%c0_15, %c0_16] : memref<128x128xf32, #tpu.memory_space<vmem>>, vector<128x128xf32>
      %16 = arith.truncf %15 : vector<128x128xf32> to vector<128x128xbf16>
      %c0_17 = arith.constant 0 : index
      %c0_18 = arith.constant 0 : index
      %17 = vector.load %arg6[%c0_17, %c0_18] : memref<128x128xbf16, #tpu.memory_space<vmem>>, vector<128x128xbf16>
      %cst_19 = arith.constant dense<0.000000e+00> : vector<128x128xf32>
      %18 = tpu.matmul %16, %17, %cst_19 {dimension_numbers = #tpu.dot_dimension_numbers<[1], [0], [0], [1], [0, 0, 1, 1], [], []>} : vector<128x128xbf16>, vector<128x128xbf16>, vector<128x128xf32> -> vector<128x128xf32>
      %19 = arith.addf %14, %18 : vector<128x128xf32>
      %c0_20 = arith.constant 0 : index
      %c0_21 = arith.constant 0 : index
      %20 = vector.load %arg7[%c0_20, %c0_21] : memref<1x128xf32, #tpu.memory_space<vmem>>, vector<1x128xf32>
      %21 = vector.broadcast %20 : vector<1x128xf32> to vector<128x128xf32>
      %22 = arith.addf %19, %21 : vector<128x128xf32>
      %cst_22 = arith.constant 0.000000e+00 : f32
      %23 = vector.broadcast %cst_22 : f32 to vector<128x128xf32>
      %24 = arith.maximumf %22, %23 : vector<128x128xf32>
      %25 = arith.truncf %24 : vector<128x128xf32> to vector<128x128xbf16>
      %c0_23 = arith.constant 0 : index
      %c0_24 = arith.constant 0 : index
      %26 = vector.load %arg8[%c0_23, %c0_24] : memref<128x256xbf16, #tpu.memory_space<vmem>>, vector<128x256xbf16>
      %cst_25 = arith.constant dense<0.000000e+00> : vector<128x256xf32>
      %27 = tpu.matmul %25, %26, %cst_25 {dimension_numbers = #tpu.dot_dimension_numbers<[1], [0], [0], [1], [0, 0, 1, 1], [], []>} : vector<128x128xbf16>, vector<128x256xbf16>, vector<128x256xf32> -> vector<128x256xf32>
      %28 = vector.extract_strided_slice %27 {offsets = [0, 0], sizes = [128, 128], strides = [1, 1]} : vector<128x256xf32> to vector<128x128xf32>
      %c0_26 = arith.constant 0 : index
      %c0_27 = arith.constant 0 : index
      %29 = vector.load %arg9[%c0_26, %c0_27] : memref<1x128xf32, #tpu.memory_space<vmem>>, vector<1x128xf32>
      %30 = vector.broadcast %29 : vector<1x128xf32> to vector<128x128xf32>
      %31 = arith.addf %28, %30 : vector<128x128xf32>
      %c0_28 = arith.constant 0 : index
      %c0_29 = arith.constant 0 : index
      %32 = vector.load %arg10[%c0_28, %c0_29] : memref<128x128xf32, #tpu.memory_space<vmem>>, vector<128x128xf32>
      tpu.vector_store %arg10[%c0_28, %c0_29], %31 {strides = array<i32>} : memref<128x128xf32, #tpu.memory_space<vmem>>, vector<128x128xf32>,
      %33 = vector.extract_strided_slice %27 {offsets = [0, 128], sizes = [128, 128], strides = [1, 1]} : vector<128x256xf32> to vector<128x128xf32>
      %34 = arith.truncf %33 : vector<128x128xf32> to vector<128x128xbf16>
      %c0_30 = arith.constant 0 : index
      %c0_31 = arith.constant 0 : index
      %35 = vector.load %arg11[%c0_30, %c0_31] : memref<128x128xbf16, #tpu.memory_space<vmem>>, vector<128x128xbf16>
      tpu.vector_store %arg11[%c0_30, %c0_31], %34 {strides = array<i32>} : memref<128x128xbf16, #tpu.memory_space<vmem>>, vector<128x128xbf16>,
    } else {
    }
    return
  }
  func.func @transform_0(%arg0: i32, %arg1: i32) -> (i32, i32) {
    %c0_i32 = arith.constant 0 : i32
    return %arg0, %arg1 : i32, i32
  }
  func.func @transform_1(%arg0: i32, %arg1: i32) -> (i32, i32) {
    %c0_i32 = arith.constant 0 : i32
    %c0_i32_0 = arith.constant 0 : i32
    return %arg1, %c0_i32 : i32, i32
  }
  func.func @transform_2(%arg0: i32, %arg1: i32) -> (i32, i32) {
    %c0_i32 = arith.constant 0 : i32
    %c0_i32_0 = arith.constant 0 : i32
    return %arg0, %c0_i32 : i32, i32
  }
  func.func @transform_3(%arg0: i32, %arg1: i32) -> (i32, i32) {
    %c0_i32 = arith.constant 0 : i32
    %c0_i32_0 = arith.constant 0 : i32
    %c0_i32_1 = arith.constant 0 : i32
    return %c0_i32, %c0_i32_0 : i32, i32
  }
  func.func @transform_4(%arg0: i32, %arg1: i32) -> (i32, i32) {
    %c0_i32 = arith.constant 0 : i32
    %c0_i32_0 = arith.constant 0 : i32
    %c0_i32_1 = arith.constant 0 : i32
    return %c0_i32, %c0_i32_0 : i32, i32
  }
  func.func @transform_5(%arg0: i32, %arg1: i32) -> (i32, i32) {
    %c0_i32 = arith.constant 0 : i32
    %c0_i32_0 = arith.constant 0 : i32
    %c0_i32_1 = arith.constant 0 : i32
    return %c0_i32, %c0_i32_0 : i32, i32
  }
  func.func @transform_6(%arg0: i32, %arg1: i32) -> (i32, i32) {
    %c0_i32 = arith.constant 0 : i32
    %c0_i32_0 = arith.constant 0 : i32
    %c0_i32_1 = arith.constant 0 : i32
    return %c0_i32, %c0_i32_0 : i32, i32
  }
  func.func @transform_7(%arg0: i32, %arg1: i32) -> (i32, i32) {
    %c0_i32 = arith.constant 0 : i32
    %c0_i32_0 = arith.constant 0 : i32
    %c0_i32_1 = arith.constant 0 : i32
    return %c0_i32, %c0_i32_0 : i32, i32
  }
  func.func @transform_8(%arg0: i32, %arg1: i32) -> (i32, i32) {
    %c0_i32 = arith.constant 0 : i32
    %c0_i32_0 = arith.constant 0 : i32
    return %arg0, %c0_i32 : i32, i32
  }
  func.func @transform_9(%arg0: i32, %arg1: i32) -> (i32, i32) {
    %c0_i32 = arith.constant 0 : i32
    %c0_i32_0 = arith.constant 0 : i32
    return %arg0, %c0_i32 : i32, i32
  }
}

</mosaic_0001>

<bundles_post_ra>
// kernel: tpu_custom_call.1
= control target key start
LH: loop header
LB: loop body
LE: loop exit
PB: predicated region body
PF: predicated region fallthrough
CT: control target
= control target key end

     0   :  { %15 = vsyncpa [#allocation4], 0  ;;  %s2102_s0 = inlined_call_operand.hbm [shape: bf16[128,128], index: 0, kind: input, shape index: {}]   ;;  %s2103_s1 = inlined_call_operand.hbm [shape: bf16[128,128], index: 1, kind: input, shape index: {}]   ;;  %s2104_s2 = inlined_call_operand.hbm [shape: bf16[128,128], index: 2, kind: input, shape index: {}]   ;;  %s2105_s3 = inlined_call_operand.hbm [shape: bf16[128,128], index: 3, kind: input, shape index: {}]   ;;  %s2106_s4 = inlined_call_operand.hbm [shape: bf16[128,128], index: 4, kind: input, shape index: {}]   ;;  %s2107_s5 = inlined_call_operand.vmem [shape: f32[1,128], index: 5, kind: input, shape index: {}]   ;;  %s2108_s6 = inlined_call_operand.hbm [shape: bf16[128,256], index: 6, kind: input, shape index: {}]   ;;  %s2109_s7 = inlined_call_operand.vmem [shape: f32[1,128], index: 7, kind: input, shape index: {}]   ;;  %s2110_s8 = inlined_call_operand.hbm [shape: f32[128,128], index: 8, kind: output, shape index: {0}]   ;;  %s2111_s9 = inlined_call_operand.hbm [shape: bf16[128,128], index: 9, kind: output, shape index: {1}]  }
   0x1   :  { %16 = vsyncpa [#allocation7], 0 }
   0x2   :  { %17 = vsyncpa [#allocation10], 0 }
   0x3   :  { %18 = vsyncpa [#allocation13], 0 }
   0x4   :  { %19 = vsyncpa [#allocation5], 0 }
   0x5   :  { %20 = vsyncpa [#allocation16], 0  ;;  %s1811_s30 = smov [#allocation6]   ;;  %s1812_s11 = smov [#allocation9]  }
   0x6   :  { %s38_s10 = sshll.u32 %s1811_s30, 4  ;;  %s62_s12 = sshll.u32 %s1812_s11, 4  ;;  %s39_s10 = int_to_ptr.vmem [resolvable:$true] %s38_s10  ;;  %s1874_s12 = int_to_ptr.vmem [resolvable:$true] %s62_s12 }
   0x7   :  { %s1623_s15 = scalar_lea.hbm %s2103_s1, 1024 }
   0x8   :  { %p1624_p0 = scmp.ne.s32.totalorder %s2103_s1, %s1623_s15  ;;  %p1627_p1 = scmp.lt.u32.totalorder %s1623_s15, %s2103_s1 }
   0xa   :  { %p1629_p2 = pnand %p1627_p1, %p1624_p0 }
   0xc   :  { %1632 = shalt.err (!%p1629_p2)
}
   0xd   :  { %s1633_s20 = scalar_lea.vmem %s39_s10, 1024  ;;  %p1638_p4 = scmp.lt.s32.totalorder %s39_s10, %s39_s10 }
   0xe   :  { %p1634_p3 = scmp.ne.s32.totalorder %s39_s10, %s1633_s20  ;;  %p1639_p5 = scmp.lt.s32.totalorder %s1633_s20, %s1633_s20 }
  0x10   :  { %p1640_p6 = por %p1639_p5, %p1638_p4 }
  0x12   :  { %p1641_p7 = pnand %p1640_p6, %p1634_p3 }
  0x14   :  { %1644 = shalt.err (!%p1641_p7)
}
  0x15   :  { %s1813_s21 = smov 64   ;;  %s1814_s22 = smov 4  }
  0x16   :  { %44 = dma.hbm_to_vmem [thread:$0]  %s2103_s1, 1024, %s39_s10, [#allocation7], %s1813_s21, %s1813_s21, %s1814_s22  }
  0x17   :  { %s1645_s27 = scalar_lea.hbm %s2105_s3, 1024 }
  0x18   :  { %p1646_p8 = scmp.ne.s32.totalorder %s2105_s3, %s1645_s27  ;;  %p1649_p9 = scmp.lt.u32.totalorder %s1645_s27, %s2105_s3 }
  0x1a   :  { %p1651_p10 = pnand %p1649_p9, %p1646_p8 }
  0x1c   :  { %1654 = shalt.err (!%p1651_p10)
}
  0x1d   :  { %s1655_s13 = scalar_lea.vmem %s1874_s12, 1024  ;;  %p1660_p12 = scmp.lt.s32.totalorder %s1874_s12, %s1874_s12 }
  0x1e   :  { %p1656_p11 = scmp.ne.s32.totalorder %s1874_s12, %s1655_s13  ;;  %p1661_p13 = scmp.lt.s32.totalorder %s1655_s13, %s1655_s13 }
  0x20   :  { %p1662_p0 = por %p1661_p13, %p1660_p12 }
  0x22   :  { %p1663_p1 = pnand %p1662_p0, %p1656_p11 }
  0x24   :  { %1666 = shalt.err (!%p1663_p1)
}
  0x25   :  { %68 = dma.hbm_to_vmem [thread:$0]  %s2105_s3, 1024, %s1874_s12, [#allocation10], %s1813_s21, %s1813_s21, %s1814_s22  }
  0x26   :  { %s1815_s14 = smov [#allocation3]   ;;  %s1816_s16 = smov [#allocation8]  }
  0x27   :  { %s26_s15 = sshll.u32 %s1815_s14, 4  ;;  %s50_s17 = sshll.u32 %s1816_s16, 4  ;;  %s27_s15 = int_to_ptr.vmem [resolvable:$true] %s26_s15  ;;  %s1911_s17 = int_to_ptr.vmem [resolvable:$true] %s50_s17 }
  0x28   :  { %s1667_s20 = scalar_lea.hbm %s2102_s0, 1024 }
  0x29   :  { %p1668_p2 = scmp.ne.s32.totalorder %s2102_s0, %s1667_s20  ;;  %p1671_p3 = scmp.lt.u32.totalorder %s1667_s20, %s2102_s0 }
  0x2b   :  { %p1673_p4 = pnand %p1671_p3, %p1668_p2 }
  0x2d   :  { %1676 = shalt.err (!%p1673_p4)
}
  0x2e   :  { %s1677_s3 = scalar_lea.vmem %s27_s15, 1024  ;;  %p1682_p6 = scmp.lt.s32.totalorder %s27_s15, %s27_s15 }
  0x2f   :  { %p1678_p5 = scmp.ne.s32.totalorder %s27_s15, %s1677_s3  ;;  %p1683_p7 = scmp.lt.s32.totalorder %s1677_s3, %s1677_s3 }
  0x31   :  { %p1684_p8 = por %p1683_p7, %p1682_p6 }
  0x33   :  { %p1685_p9 = pnand %p1684_p8, %p1678_p5 }
  0x35   :  { %1688 = shalt.err (!%p1685_p9)
}
  0x36   :  { %32 = dma.hbm_to_vmem [thread:$0]  %s2102_s0, 1024, %s27_s15, [#allocation4], %s1813_s21, %s1813_s21, %s1814_s22  }
  0x37   :  { %s1689_s30 = scalar_lea.hbm %s2104_s2, 1024 }
  0x38   :  { %p1690_p10 = scmp.ne.s32.totalorder %s2104_s2, %s1689_s30  ;;  %p1693_p11 = scmp.lt.u32.totalorder %s1689_s30, %s2104_s2 }
  0x3a   :  { %p1695_p12 = pnand %p1693_p11, %p1690_p10 }
  0x3c   :  { %1698 = shalt.err (!%p1695_p12)
}
  0x3d   :  { %s1699_s14 = scalar_lea.vmem %s1911_s17, 1024  ;;  %p1704_p0 = scmp.lt.s32.totalorder %s1911_s17, %s1911_s17 }
  0x3e   :  { %p1700_p13 = scmp.ne.s32.totalorder %s1911_s17, %s1699_s14  ;;  %p1705_p1 = scmp.lt.s32.totalorder %s1699_s14, %s1699_s14 }
  0x40   :  { %p1706_p2 = por %p1705_p1, %p1704_p0 }
  0x42   :  { %p1707_p3 = pnand %p1706_p2, %p1700_p13 }
  0x44   :  { %1710 = shalt.err (!%p1707_p3)
}
  0x45   :  { %56 = dma.hbm_to_vmem [thread:$0]  %s2104_s2, 1024, %s1911_s17, [#allocation7], %s1813_s21, %s1813_s21, %s1814_s22  }
  0x46   :  { %s1817_s16 = smov [#allocation11]   ;;  %s1818_s19 = smov [#allocation12]  }
  0x47   :  { %s74_s18 = sshll.u32 %s1817_s16, 4  ;;  %s88_s20 = sshll.u32 %s1818_s19, 4  ;;  %s75_s18 = int_to_ptr.vmem [resolvable:$true] %s74_s18  ;;  %s1948_s20 = int_to_ptr.vmem [resolvable:$true] %s88_s20 }
  0x48   :  { %s1711_s25 = scalar_lea.hbm %s2106_s4, 1024 }
  0x49   :  { %p1712_p4 = scmp.ne.s32.totalorder %s2106_s4, %s1711_s25  ;;  %p1715_p5 = scmp.lt.u32.totalorder %s1711_s25, %s2106_s4 }
  0x4b   :  { %p1717_p6 = pnand %p1715_p5, %p1712_p4 }
  0x4d   :  { %1720 = shalt.err (!%p1717_p6)
}
  0x4e   :  { %s1721_s2 = scalar_lea.vmem %s75_s18, 1024  ;;  %p1726_p8 = scmp.lt.s32.totalorder %s75_s18, %s75_s18 }
  0x4f   :  { %p1722_p7 = scmp.ne.s32.totalorder %s75_s18, %s1721_s2  ;;  %p1727_p9 = scmp.lt.s32.totalorder %s1721_s2, %s1721_s2 }
  0x51   :  { %p1728_p10 = por %p1727_p9, %p1726_p8 }
  0x53   :  { %p1729_p11 = pnand %p1728_p10, %p1722_p7 }
  0x55   :  { %1732 = shalt.err (!%p1729_p11)
}
  0x56   :  { %80 = dma.hbm_to_vmem [thread:$0]  %s2106_s4, 1024, %s75_s18, [#allocation10], %s1813_s21, %s1813_s21, %s1814_s22  }
  0x57   :  { %s1733_s11 = scalar_lea.hbm %s2108_s6, 2048 }
  0x58   :  { %p1734_p12 = scmp.ne.s32.totalorder %s2108_s6, %s1733_s11  ;;  %p1737_p13 = scmp.lt.u32.totalorder %s1733_s11, %s2108_s6 }
  0x5a   :  { %p1739_p0 = pnand %p1737_p13, %p1734_p12 }
  0x5c   :  { %1742 = shalt.err (!%p1739_p0)
}
  0x5d   :  { %s1743_s0 = scalar_lea.vmem %s1948_s20, 2048  ;;  %p1748_p2 = scmp.lt.s32.totalorder %s1948_s20, %s1948_s20 }
  0x5e   :  { %p1744_p1 = scmp.ne.s32.totalorder %s1948_s20, %s1743_s0  ;;  %p1749_p3 = scmp.lt.s32.totalorder %s1743_s0, %s1743_s0 }
  0x60   :  { %p1750_p4 = por %p1749_p3, %p1748_p2 }
  0x62   :  { %p1751_p5 = pnand %p1750_p4, %p1744_p1 }
  0x64   :  { %1754 = shalt.err (!%p1751_p5)
}
  0x65   :  { %s1819_s4 = smov 128   ;;  %s1820_s15 = smov 8  }
  0x66   :  { %94 = dma.hbm_to_vmem [thread:$0]  %s2108_s6, 2048, %s1948_s20, [#allocation13], %s1819_s4, %s1819_s4, %s1820_s15  }
  0x67   :  { %1799 = dma.done.wait [#allocation4], 1024  }
  0x68   :  { %1800 = vsyncadd [#allocation4], 4294966272 }
  0x69   :  { %1801 = dma.done.wait [#allocation7], 2048  }
  0x6a   :  { %1802 = vsyncadd [#allocation7], 4294965248 }
  0x6b   :  { %1803 = dma.done.wait [#allocation10], 2048  }
  0x6c   :  { %1804 = vsyncadd [#allocation10], 4294965248 }
  0x6d   :  { %1805 = dma.done.wait [#allocation13], 2048  }
  0x6e   :  { %1806 = vsyncadd [#allocation13], 4294965248  ;;  %v1559_v0 = vld [vmem:[#allocation6] sm:$0xff]   ;;  %v1560_v1 = vld [vmem:[#allocation6 + $0x8] sm:$0xff]   ;;  %s1823_s24 = smov [#allocation15]  }
  0x6f   :  { %1418 = vmatprep.subr.bf16.mxu0 %v1559_v0  ;;  %v1561_v2 = vld [vmem:[#allocation6 + $0x10] sm:$0xff]   ;;  %v1562_v3 = vld [vmem:[#allocation6 + $0x18] sm:$0xff]   ;;  %v1567_v4 = vld [vmem:[#allocation3] sm:$0xff]   ;;  %s1214_s25 = sshll.u32 %s1823_s24, 4  ;;  %s2065_s25 = int_to_ptr.vmem [resolvable:$true] %s1214_s25 }
  0x70   :  { %1419 = vmatpush3.bf16.msra.mxu0 %v1559_v0  ;;  %1434 = vmatprep.mubr.bf16.mxu0 %v1567_v4  ;;  %v1563_v5 = vld [vmem:[#allocation6 + $0x20] sm:$0xff]   ;;  %v1564_v6 = vld [vmem:[#allocation6 + $0x28] sm:$0xff]   ;;  %v1565_v9 = vld [vmem:[#allocation6 + $0x30] sm:$0xff]  }
  0x71   :  { %1420 = vmatprep.subr.bf16.mxu0 %v1560_v1  ;;  %v1575_v7 = vld [vmem:[#allocation11] sm:$0xff]   ;;  %v1576_v8 = vld [vmem:[#allocation11 + $0x8] sm:$0xff]   ;;  %v1577_v10 = vld [vmem:[#allocation11 + $0x10] sm:$0xff]  }
  0x72   :  { %1450 = vmatprep.subr.bf16.mxu1 %v1575_v7  ;;  %v1566_v11 = vld [vmem:[#allocation6 + $0x38] sm:$0xff]   ;;  %v1579_v13 = vld [vmem:[#allocation11 + $0x20] sm:$0xff]   ;;  %v1568_v14 = vld [vmem:[#allocation3 + $0x8] sm:$0xff]  }
  0x73   :  { %1451 = vmatpush3.bf16.msra.mxu1 %v1575_v7  ;;  %v1578_v12 = vld [vmem:[#allocation11 + $0x18] sm:$0xff]   ;;  %v1569_v15 = vld [vmem:[#allocation3 + $0x10] sm:$0xff]   ;;  %v1580_v16 = vld [vmem:[#allocation11 + $0x28] sm:$0xff]  }
  0x74   :  { %1421 = vmatpush3.bf16.msra.mxu0 %v1560_v1  ;;  %1452 = vmatprep.subr.bf16.mxu1 %v1576_v8  ;;  %v1581_v17 = vld [vmem:[#allocation11 + $0x30] sm:$0xff]   ;;  %v1570_v18 = vld [vmem:[#allocation3 + $0x18] sm:$0xff]   ;;  %v1571_v19 = vld [vmem:[#allocation3 + $0x20] sm:$0xff]  }
  0x75   :  { %1422 = vmatprep.subr.bf16.mxu0 %v1561_v2  ;;  %v1572_v20 = vld [vmem:[#allocation3 + $0x28] sm:$0xff]   ;;  %v1573_v21 = vld [vmem:[#allocation3 + $0x30] sm:$0xff]   ;;  %v1574_v22 = vld [vmem:[#allocation3 + $0x38] sm:$0xff]  }
  0x76   :  { %v1582_v23 = vld [vmem:[#allocation11 + $0x38] sm:$0xff]   ;;  %v1583_v24 = vld [vmem:[#allocation9] sm:$0xff]   ;;  %v1584_v43 = vld [vmem:[#allocation9 + $0x8] sm:$0xff]  }
  0x77   :  { %1453 = vmatpush3.bf16.msra.mxu1 %v1576_v8  ;;  %v1985_v25 = vld [vmem:[#allocation12] ss:$8 sps:$4 sm:$0xff]   ;;  %v1987_v26 = vld [vmem:[#allocation12 + $0x4] ss:$8 sps:$4 sm:$0xff]   ;;  %v1989_v27 = vld [vmem:[#allocation12 + $0x14] ss:$8 sps:$4 sm:$0xff]  }
  0x78   :  { %1423 = vmatpush3.bf16.msra.mxu0 %v1561_v2  ;;  %1454 = vmatprep.subr.bf16.mxu1 %v1577_v10  ;;  %v1993_v28 = vld [vmem:[#allocation12 + $0x10] ss:$8 sps:$4 sm:$0xff]   ;;  %v1996_v29 = vld [vmem:[#allocation12 + $0x24] ss:$8 sps:$4 sm:$0xff]   ;;  %v1999_v30 = vld [vmem:[#allocation12 + $0x20] ss:$8 sps:$4 sm:$0xff]  }
  0x79   :  { %1424 = vmatprep.subr.bf16.mxu0 %v1562_v3  ;;  %v2002_v31 = vld [vmem:[#allocation12 + $0x34] ss:$8 sps:$4 sm:$0xff]   ;;  %v2005_v32 = vld [vmem:[#allocation12 + $0x30] ss:$8 sps:$4 sm:$0xff]   ;;  %v2008_v33 = vld [vmem:[#allocation12 + $0x44] ss:$8 sps:$4 sm:$0xff]  }
  0x7a   :  { %v2011_v34 = vld [vmem:[#allocation12 + $0x40] ss:$8 sps:$4 sm:$0xff]   ;;  %v2014_v35 = vld [vmem:[#allocation12 + $0x54] ss:$8 sps:$4 sm:$0xff]   ;;  %v2017_v36 = vld [vmem:[#allocation12 + $0x50] ss:$8 sps:$4 sm:$0xff]  }
  0x7b   :  { %1455 = vmatpush3.bf16.msra.mxu1 %v1577_v10  ;;  %v1585_v46 = vld [vmem:[#allocation9 + $0x10] sm:$0xff]   ;;  %v1586_v51 = vld [vmem:[#allocation9 + $0x18] sm:$0xff]   ;;  %v1587_v54 = vld [vmem:[#allocation9 + $0x20] sm:$0xff]  }
  0x7c   :  { %1425 = vmatpush3.bf16.msra.mxu0 %v1562_v3  ;;  %1456 = vmatprep.subr.bf16.mxu1 %v1578_v12  ;;  %v1588_v59 = vld [vmem:[#allocation9 + $0x28] sm:$0xff]   ;;  %v1589_v62 = vld [vmem:[#allocation9 + $0x30] sm:$0xff]   ;;  %v1591_v3 = vld [vmem:[#allocation8] sm:$0xff]  }
  0x7d   :  { %1426 = vmatprep.subr.bf16.mxu0 %v1563_v5  ;;  %v1590_v4 = vld [vmem:[#allocation9 + $0x38] sm:$0xff]   ;;  %v1595_v8 = vld [vmem:[#allocation8 + $0x20] sm:$0xff]   ;;  %v1597_v10 = vld [vmem:[#allocation8 + $0x30] sm:$0xff]  }
  0x7e   :  { %v1594_v7 = vld [vmem:[#allocation8 + $0x18] sm:$0xff]  }
  0x7f   :  { %1457 = vmatpush3.bf16.msra.mxu1 %v1578_v12  ;;  %v1619_v12 = vld [vmem:[#allocation12 + $0x64] ss:$8 sps:$4 sm:$0xff]  }
  0x80   :  { %1427 = vmatpush3.bf16.msra.mxu0 %v1563_v5  ;;  %1458 = vmatprep.subr.bf16.mxu1 %v1579_v13  ;;  %v1592_v5 = vld [vmem:[#allocation8 + $0x8] sm:$0xff]  }
  0x81   :  { %1428 = vmatprep.subr.bf16.mxu0 %v1564_v6 }
  0x83   :  { %1459 = vmatpush3.bf16.msra.mxu1 %v1579_v13  ;;  %v1617_v13 = vld [vmem:[#allocation12 + $0x60] ss:$8 sps:$4 sm:$0xff]  }
  0x84   :  { %1429 = vmatpush3.bf16.msra.mxu0 %v1564_v6  ;;  %1460 = vmatprep.subr.bf16.mxu1 %v1580_v16  ;;  %v1593_v6 = vld [vmem:[#allocation8 + $0x10] sm:$0xff]  }
  0x85   :  { %1430 = vmatprep.subr.bf16.mxu0 %v1565_v9 }
  0x87   :  { %1461 = vmatpush3.bf16.msra.mxu1 %v1580_v16  ;;  %v1821_v16 = vmov 0  }
  0x88   :  { %1431 = vmatpush3.bf16.msra.mxu0 %v1565_v9  ;;  %1462 = vmatprep.subr.bf16.mxu1 %v1581_v17  ;;  %v1596_v9 = vld [vmem:[#allocation8 + $0x28] sm:$0xff]  }
  0x89   :  { %1432 = vmatprep.subr.bf16.mxu0 %v1566_v11 }
  0x8b   :  { %1463 = vmatpush3.bf16.msra.mxu1 %v1581_v17  ;;  %v1273_v17 = vld [vmem:[%s2107_s5] ss:$0 sm:$0xff] }
  0x8c   :  { %1433 = vmatpush3.bf16.msra.mxu0 %v1566_v11  ;;  %1464 = vmatprep.subr.bf16.mxu1 %v1582_v23  ;;  %v1598_v11 = vld [vmem:[#allocation8 + $0x38] sm:$0xff]  }
  0x8d   :  { %965 = vmatprep.subr.bf16.mxu0 %v1987_v26 }
  0x8f   :  { %1435 = vmatmul.mubr.bf16.vlgmr.msra.gmra.mrb[0].mxu0 %v1568_v14  ;;  %1465 = vmatpush3.bf16.msra.mxu1 %v1582_v23  ;;  %v1622_v14 = vld [vmem:[#allocation12 + $0x74] ss:$8 sps:$4 sm:$0xff]  }
  0x90   :  { %1438 = vmatprep.mubr.bf16.mxu0 %v1569_v15  ;;  %1482 = vmatprep.subr.bf16.mxu1 %v1583_v24  ;;  %v1620_v15 = vld [vmem:[#allocation12 + $0x70] ss:$8 sps:$4 sm:$0xff]  }
  0x91   :  { %966 = vmatpush1.bf16.msra.mxu0 %v1985_v25 }
  0x92   :  { %967 = vmatprep.subr.bf16.mxu0 %v1989_v27 }
  0x95   :  { %968 = vmatpush1.bf16.msra.mxu0 %v1993_v28 }
  0x96   :  { %969 = vmatprep.subr.bf16.mxu0 %v1996_v29 }
  0x97   :  { %1439 = vmatmul.mubr.bf16.gmra.mrb[4].mxu0 %v1570_v18 }
  0x98   :  { %1442 = vmatprep.mubr.bf16.mxu0 %v1571_v19 }
  0x99   :  { %970 = vmatpush1.bf16.msra.mxu0 %v1999_v30 }
  0x9a   :  { %971 = vmatprep.subr.bf16.mxu0 %v2002_v31 }
  0x9d   :  { %972 = vmatpush1.bf16.msra.mxu0 %v2005_v32 }
  0x9e   :  { %973 = vmatprep.subr.bf16.mxu0 %v2008_v33 }
  0x9f   :  { %1443 = vmatmul.mubr.bf16.gmra.mrb[8].mxu0 %v1572_v20 }
  0xa0   :  { %1446 = vmatprep.mubr.bf16.mxu0 %v1573_v21 }
  0xa1   :  { %974 = vmatpush1.bf16.msra.mxu0 %v2011_v34 }
  0xa2   :  { %975 = vmatprep.subr.bf16.mxu0 %v2014_v35 }
  0xa5   :  { %976 = vmatpush1.bf16.msra.mxu0 %v2017_v36 }
  0xa6   :  { %977 = vmatprep.subr.bf16.mxu0 %v1619_v12 }
  0xa7   :  { %1447 = vmatmul.mubr.bf16.gmra.mrb[12].mxu0 %v1574_v22 }
  0xa8   :  { %997 = vmatprep.mubr.bf16.mxu0 %v1821_v16 }
  0xa9   :  { %978 = vmatpush1.bf16.msra.mxu0 %v1617_v13 }
  0xaa   :  { %979 = vmatprep.subr.bf16.mxu0 %v1622_v14 }
  0xad   :  { %980 = vmatpush1.bf16.msra.mxu0 %v1620_v15 }
 0x162   :  { %v1436_v37 = vpop.f32.mrb[0].mxu0 }
 0x163   :  { %v314_v38 = vpop.f32.mrb[1].mxu0 }
 0x164   :  { %v1437_v39 = vpop.f32.mrb[2].mxu0 }
 0x165   :  { %v461_v40 = vpack.c.bf16 %v1437_v39, %v1436_v37  ;;  %v317_v41 = vpop.f32.mrb[3].mxu0 }
 0x166   :  { %v460_v42 = vpack.c.bf16 %v317_v41, %v314_v38 }
 0x168   :  { %1466 = vmatprep.mubr.bf16.mxu1 %v460_v42 }
 0x169   :  { %1467 = vmatmul.mubr.bf16.vlgmr.msra.gmra.mrb[0].mxu1 %v461_v40 }
 0x16a   :  { %1483 = vmatpush3.bf16.msra.mxu1 %v1583_v24  ;;  %v1440_v44 = vpop.f32.mrb[4].mxu0 }
 0x16b   :  { %v330_v45 = vpop.f32.mrb[5].mxu0  ;;  %1484 = vmatprep.subr.bf16.mxu1 %v1584_v43 }
 0x16c   :  { %v1441_v47 = vpop.f32.mrb[6].mxu0 }
 0x16d   :  { %v463_v48 = vpack.c.bf16 %v1441_v47, %v1440_v44  ;;  %v333_v49 = vpop.f32.mrb[7].mxu0 }
 0x16e   :  { %v462_v50 = vpack.c.bf16 %v333_v49, %v330_v45  ;;  %1485 = vmatpush3.bf16.msra.mxu1 %v1584_v43 }
 0x16f   :  { %1486 = vmatprep.subr.bf16.mxu1 %v1585_v46 }
 0x170   :  { %1470 = vmatprep.mubr.bf16.mxu1 %v462_v50 }
 0x171   :  { %1471 = vmatmul.mubr.bf16.gmra.mrb[4].mxu1 %v463_v48 }
 0x172   :  { %1487 = vmatpush3.bf16.msra.mxu1 %v1585_v46  ;;  %v1444_v52 = vpop.f32.mrb[8].mxu0 }
 0x173   :  { %v346_v53 = vpop.f32.mrb[9].mxu0  ;;  %1488 = vmatprep.subr.bf16.mxu1 %v1586_v51 }
 0x174   :  { %v1445_v55 = vpop.f32.mrb[10].mxu0 }
 0x175   :  { %v465_v56 = vpack.c.bf16 %v1445_v55, %v1444_v52  ;;  %v349_v57 = vpop.f32.mrb[11].mxu0 }
 0x176   :  { %v464_v58 = vpack.c.bf16 %v349_v57, %v346_v53  ;;  %1489 = vmatpush3.bf16.msra.mxu1 %v1586_v51 }
 0x177   :  { %1490 = vmatprep.subr.bf16.mxu1 %v1587_v54 }
 0x178   :  { %1474 = vmatprep.mubr.bf16.mxu1 %v464_v58 }
 0x179   :  { %1475 = vmatmul.mubr.bf16.gmra.mrb[8].mxu1 %v465_v56 }
 0x17a   :  { %1491 = vmatpush3.bf16.msra.mxu1 %v1587_v54  ;;  %v1448_v60 = vpop.f32.mrb[12].mxu0 }
 0x17b   :  { %v362_v61 = vpop.f32.mrb[13].mxu0  ;;  %1492 = vmatprep.subr.bf16.mxu1 %v1588_v59 }
 0x17c   :  { %v1449_v63 = vpop.f32.mrb[14].mxu0 }
 0x17d   :  { %v467_v0 = vpack.c.bf16 %v1449_v63, %v1448_v60  ;;  %v365_v1 = vpop.f32.mrb[15].mxu0 }
 0x17e   :  { %v466_v2 = vpack.c.bf16 %v365_v1, %v362_v61  ;;  %1493 = vmatpush3.bf16.msra.mxu1 %v1588_v59 }
 0x17f   :  { %1494 = vmatprep.subr.bf16.mxu1 %v1589_v62 }
 0x180   :  { %1478 = vmatprep.mubr.bf16.mxu1 %v466_v2 }
 0x181   :  { %1479 = vmatmul.mubr.bf16.gmra.mrb[12].mxu1 %v467_v0 }
 0x182   :  { %1495 = vmatpush3.bf16.msra.mxu1 %v1589_v62  ;;  %1498 = vmatprep.mubr.bf16.mxu1 %v1591_v3 }
 0x183   :  { %1496 = vmatprep.subr.bf16.mxu1 %v1590_v4 }
 0x186   :  { %1497 = vmatpush3.bf16.msra.mxu1 %v1590_v4 }
 0x187   :  { %1514 = vmatprep.subr.bf16.mxu1 %v1987_v26 }
 0x189   :  { %1499 = vmatmul.mubr.bf16.vlgmr.msra.gmra.mrb[0].mxu1 %v1592_v5 }
 0x18a   :  { %1502 = vmatprep.mubr.bf16.mxu1 %v1593_v6  ;;  %1522 = vmatpush1.bf16.msra.mxu1 %v1985_v25 }
 0x18b   :  { %1515 = vmatprep.subr.bf16.mxu1 %v1989_v27 }
 0x18e   :  { %1523 = vmatpush1.bf16.msra.mxu1 %v1993_v28 }
 0x18f   :  { %1516 = vmatprep.subr.bf16.mxu1 %v1996_v29 }
 0x191   :  { %1503 = vmatmul.mubr.bf16.gmra.mrb[4].mxu1 %v1594_v7 }
 0x192   :  { %1506 = vmatprep.mubr.bf16.mxu1 %v1595_v8  ;;  %1524 = vmatpush1.bf16.msra.mxu1 %v1999_v30 }
 0x193   :  { %1517 = vmatprep.subr.bf16.mxu1 %v2002_v31 }
 0x196   :  { %1525 = vmatpush1.bf16.msra.mxu1 %v2005_v32 }
 0x197   :  { %1518 = vmatprep.subr.bf16.mxu1 %v2008_v33 }
 0x199   :  { %1507 = vmatmul.mubr.bf16.gmra.mrb[8].mxu1 %v1596_v9 }
 0x19a   :  { %1510 = vmatprep.mubr.bf16.mxu1 %v1597_v10  ;;  %1526 = vmatpush1.bf16.msra.mxu1 %v2011_v34  ;;  %v2047_v10 = vld [vmem:[%s2109_s7] ss:$0 sm:$0xff]  ;;  %s1822_s7 = smov [#allocation14]  }
 0x19b   :  { %1519 = vmatprep.subr.bf16.mxu1 %v2014_v35  ;;  %s1202_s23 = sshll.u32 %s1822_s7, 4  ;;  %s1203_s23 = int_to_ptr.vmem [resolvable:$true] %s1202_s23 }
 0x19c   :  { %s1755_s26 = scalar_lea.vmem %s1203_s23, 2048  ;;  %p1760_p7 = scmp.lt.s32.totalorder %s1203_s23, %s1203_s23 }
 0x19d   :  { %p1756_p6 = scmp.ne.s32.totalorder %s1203_s23, %s1755_s26  ;;  %p1761_p8 = scmp.lt.s32.totalorder %s1755_s26, %s1755_s26 }
 0x19e   :  { %1527 = vmatpush1.bf16.msra.mxu1 %v2017_v36 }
 0x19f   :  { %1520 = vmatprep.subr.bf16.mxu1 %v1619_v12  ;;  %p1762_p9 = por %p1761_p8, %p1760_p7 }
 0x1a1   :  { %1511 = vmatmul.mubr.bf16.gmra.mrb[12].mxu1 %v1598_v11  ;;  %p1763_p10 = pnand %p1762_p9, %p1756_p6 }
 0x1a2   :  { %1528 = vmatpush1.bf16.msra.mxu1 %v1617_v13  ;;  %1057 = vmatprep.mubr.bf16.mxu1 %v1821_v16 }
 0x1a3   :  { %1521 = vmatprep.subr.bf16.mxu1 %v1622_v14 }
 0x1a6   :  { %1529 = vmatpush1.bf16.msra.mxu1 %v1620_v15 }
 0x25c   :  { %v1500_v18 = vpop.f32.mrb[0].mxu1 }
 0x25d   :  { %v831_v19 = vadd.f32 %v1500_v18, %v1273_v17  ;;  %v759_v20 = vpop.f32.mrb[1].mxu1 }
 0x25e   :  { %v829_v21 = vadd.f32 %v1273_v17, %v759_v20  ;;  %v1501_v22 = vpop.f32.mrb[2].mxu1 }
 0x25f   :  { %v832_v23 = vadd.f32 %v1501_v22, %v1273_v17  ;;  %v762_v24 = vpop.f32.mrb[3].mxu1  ;;  %v847_v26 = vmax.f32 %v831_v19, 0.0 }
 0x260   :  { %v830_v25 = vadd.f32 %v1273_v17, %v762_v24  ;;  %v845_v28 = vmax.f32 %v829_v21, 0.0 }
 0x261   :  { %v848_v27 = vmax.f32 %v832_v23, 0.0 }
 0x262   :  { %v846_v29 = vmax.f32 %v830_v25, 0.0 }
 0x263   :  { %v862_v30 = vpack.c.bf16 %v848_v27, %v847_v26 }
 0x264   :  { %v861_v31 = vpack.c.bf16 %v846_v29, %v845_v28  ;;  %v1504_v32 = vpop.f32.mrb[4].mxu1 }
 0x265   :  { %v835_v33 = vadd.f32 %v1504_v32, %v1273_v17  ;;  %v775_v34 = vpop.f32.mrb[5].mxu1 }
 0x266   :  { %v833_v35 = vadd.f32 %v1273_v17, %v775_v34  ;;  %v1505_v36 = vpop.f32.mrb[6].mxu1  ;;  %998 = vmatmul.mubr.bf16.vlgmr.msra.gmra.mrb[16].mxu0 %v861_v31 }
 0x267   :  { %v836_v37 = vadd.f32 %v1505_v36, %v1273_v17  ;;  %v778_v38 = vpop.f32.mrb[7].mxu1  ;;  %1007 = vmatprep.mubr.bf16.mxu0 %v1821_v16  ;;  %v851_v40 = vmax.f32 %v835_v33, 0.0 }
 0x268   :  { %v834_v39 = vadd.f32 %v1273_v17, %v778_v38  ;;  %v849_v42 = vmax.f32 %v833_v35, 0.0 }
 0x269   :  { %v852_v41 = vmax.f32 %v836_v37, 0.0 }
 0x26a   :  { %v850_v43 = vmax.f32 %v834_v39, 0.0 }
 0x26b   :  { %v864_v44 = vpack.c.bf16 %v852_v41, %v851_v40 }
 0x26c   :  { %v863_v45 = vpack.c.bf16 %v850_v43, %v849_v42  ;;  %v1508_v46 = vpop.f32.mrb[8].mxu1 }
 0x26d   :  { %v839_v47 = vadd.f32 %v1508_v46, %v1273_v17  ;;  %v791_v48 = vpop.f32.mrb[9].mxu1 }
 0x26e   :  { %v837_v49 = vadd.f32 %v1273_v17, %v791_v48  ;;  %v1509_v50 = vpop.f32.mrb[10].mxu1  ;;  %1008 = vmatmul.mubr.bf16.gmra.mrb[20].mxu0 %v862_v30 }
 0x26f   :  { %v840_v51 = vadd.f32 %v1509_v50, %v1273_v17  ;;  %v794_v52 = vpop.f32.mrb[11].mxu1  ;;  %1017 = vmatprep.mubr.bf16.mxu0 %v1821_v16  ;;  %v855_v54 = vmax.f32 %v839_v47, 0.0 }
 0x270   :  { %v838_v53 = vadd.f32 %v1273_v17, %v794_v52  ;;  %v853_v56 = vmax.f32 %v837_v49, 0.0 }
 0x271   :  { %v856_v55 = vmax.f32 %v840_v51, 0.0 }
 0x272   :  { %v854_v57 = vmax.f32 %v838_v53, 0.0 }
 0x273   :  { %v866_v58 = vpack.c.bf16 %v856_v55, %v855_v54 }
 0x274   :  { %v865_v59 = vpack.c.bf16 %v854_v57, %v853_v56  ;;  %v1512_v60 = vpop.f32.mrb[12].mxu1 }
 0x275   :  { %v843_v61 = vadd.f32 %v1512_v60, %v1273_v17  ;;  %v807_v62 = vpop.f32.mrb[13].mxu1 }
 0x276   :  { %v841_v63 = vadd.f32 %v1273_v17, %v807_v62  ;;  %v1513_v0 = vpop.f32.mrb[14].mxu1  ;;  %1018 = vmatmul.mubr.bf16.gmra.mrb[24].mxu0 %v863_v45 }
 0x277   :  { %v844_v1 = vadd.f32 %v1513_v0, %v1273_v17  ;;  %v810_v2 = vpop.f32.mrb[15].mxu1  ;;  %1027 = vmatprep.mubr.bf16.mxu0 %v1821_v16  ;;  %v859_v4 = vmax.f32 %v843_v61, 0.0 }
 0x278   :  { %v842_v3 = vadd.f32 %v1273_v17, %v810_v2  ;;  %v857_v6 = vmax.f32 %v841_v63, 0.0 }
 0x279   :  { %v860_v5 = vmax.f32 %v844_v1, 0.0 }
 0x27a   :  { %v858_v7 = vmax.f32 %v842_v3, 0.0 }
 0x27b   :  { %v868_v8 = vpack.c.bf16 %v860_v5, %v859_v4 }
 0x27c   :  { %v867_v9 = vpack.c.bf16 %v858_v7, %v857_v6 }
 0x27e   :  { %1028 = vmatmul.mubr.bf16.gmra.mrb[28].mxu0 %v864_v44  ;;  %1058 = vmatmul.mubr.bf16.vlgmr.msra.gmra.mrb[16].mxu1 %v867_v9 }
 0x27f   :  { %1037 = vmatprep.mubr.bf16.mxu0 %v1821_v16  ;;  %1067 = vmatprep.mubr.bf16.mxu1 %v1821_v16 }
 0x286   :  { %1038 = vmatmul.mubr.bf16.gmra.mrb[32].mxu0 %v865_v59  ;;  %1068 = vmatmul.mubr.bf16.gmra.mrb[20].mxu1 %v868_v8 }
 0x287   :  { %1047 = vmatprep.mubr.bf16.mxu0 %v1821_v16 }
 0x28e   :  { %1048 = vmatmul.mubr.bf16.gmra.mrb[36].mxu0 %v866_v58 }
 0x339   :  { %v999_v11 = vpop.f32.mrb[16].mxu0 }
 0x33a   :  { %v1085_v12 = vadd.f32 %v2047_v10, %v999_v11  ;;  %v1001_v13 = vpop.f32.mrb[17].mxu0 }
 0x33b   :  { %v1003_v14 = vpop.f32.mrb[18].mxu0 }
 0x33c   :  { %1101 = vst [vmem:[#allocation14] sm:$0xff] %v1085_v12  ;;  %v1086_v15 = vadd.f32 %v2047_v10, %v1003_v14  ;;  %v1005_v17 = vpop.f32.mrb[19].mxu0 }
 0x33d   :  { %v1326_v18 = vpack.c.bf16 %v1005_v17, %v1001_v13 }
 0x33e   :  { %1102 = vst [vmem:[#allocation14 + $0x8] sm:$0xff] %v1086_v15 }
 0x33f   :  { %1327 = vst [vmem:[#allocation15] sm:$0xff] %v1326_v18  }
 0x341   :  { %v1009_v19 = vpop.f32.mrb[20].mxu0 }
 0x342   :  { %v1087_v16 = vadd.f32 %v2047_v10, %v1009_v19  ;;  %v1011_v20 = vpop.f32.mrb[21].mxu0 }
 0x343   :  { %v1013_v21 = vpop.f32.mrb[22].mxu0 }
 0x344   :  { %1103 = vst [vmem:[#allocation14 + $0x10] sm:$0xff] %v1087_v16  ;;  %v1088_v22 = vadd.f32 %v2047_v10, %v1013_v21  ;;  %v1015_v23 = vpop.f32.mrb[23].mxu0 }
 0x345   :  { %v1331_v24 = vpack.c.bf16 %v1015_v23, %v1011_v20 }
 0x346   :  { %1104 = vst [vmem:[#allocation14 + $0x18] sm:$0xff] %v1088_v22 }
 0x347   :  { %1363 = vst [vmem:[#allocation15 + $0x8] sm:$0xff] %v1331_v24  }
 0x349   :  { %v1019_v25 = vpop.f32.mrb[24].mxu0 }
 0x34a   :  { %v1089_v26 = vadd.f32 %v2047_v10, %v1019_v25  ;;  %v1021_v27 = vpop.f32.mrb[25].mxu0 }
 0x34b   :  { %v1023_v28 = vpop.f32.mrb[26].mxu0 }
 0x34c   :  { %1105 = vst [vmem:[#allocation14 + $0x20] sm:$0xff] %v1089_v26  ;;  %v1090_v29 = vadd.f32 %v2047_v10, %v1023_v28  ;;  %v1025_v30 = vpop.f32.mrb[27].mxu0 }
 0x34d   :  { %v1336_v31 = vpack.c.bf16 %v1025_v30, %v1021_v27 }
 0x34e   :  { %1106 = vst [vmem:[#allocation14 + $0x28] sm:$0xff] %v1090_v29 }
 0x34f   :  { %1364 = vst [vmem:[#allocation15 + $0x10] sm:$0xff] %v1336_v31  }
 0x351   :  { %v1029_v32 = vpop.f32.mrb[28].mxu0  ;;  %v1059_v33 = vpop.f32.mrb[16].mxu1 }
 0x352   :  { %v1091_v34 = vadd.f32 %v2047_v10, %v1029_v32  ;;  %v1097_v35 = vadd.f32 %v2047_v10, %v1059_v33  ;;  %v1031_v36 = vpop.f32.mrb[29].mxu0  ;;  %v1061_v37 = vpop.f32.mrb[17].mxu1 }
 0x353   :  { %v1033_v38 = vpop.f32.mrb[30].mxu0  ;;  %v1063_v39 = vpop.f32.mrb[18].mxu1 }
 0x354   :  { %1107 = vst [vmem:[#allocation14 + $0x30] sm:$0xff] %v1091_v34  ;;  %1113 = vst [vmem:[#allocation14 + $0x60] sm:$0xff] %v1097_v35  ;;  %v1092_v40 = vadd.f32 %v2047_v10, %v1033_v38  ;;  %v1098_v41 = vadd.f32 %v2047_v10, %v1063_v39  ;;  %v1035_v42 = vpop.f32.mrb[31].mxu0  ;;  %v1065_v43 = vpop.f32.mrb[19].mxu1 }
 0x355   :  { %v1341_v44 = vpack.c.bf16 %v1035_v42, %v1031_v36  ;;  %v1356_v45 = vpack.c.bf16 %v1065_v43, %v1061_v37 }
 0x356   :  { %1108 = vst [vmem:[#allocation14 + $0x38] sm:$0xff] %v1092_v40  ;;  %1114 = vst [vmem:[#allocation14 + $0x68] sm:$0xff] %v1098_v41 }
 0x357   :  { %1365 = vst [vmem:[#allocation15 + $0x18] sm:$0xff] %v1341_v44   ;;  %1368 = vst [vmem:[#allocation15 + $0x30] sm:$0xff] %v1356_v45  }
 0x359   :  { %v1039_v46 = vpop.f32.mrb[32].mxu0  ;;  %v1069_v47 = vpop.f32.mrb[20].mxu1 }
 0x35a   :  { %v1093_v48 = vadd.f32 %v2047_v10, %v1039_v46  ;;  %v1099_v49 = vadd.f32 %v2047_v10, %v1069_v47  ;;  %v1041_v50 = vpop.f32.mrb[33].mxu0  ;;  %v1071_v51 = vpop.f32.mrb[21].mxu1 }
 0x35b   :  { %v1043_v52 = vpop.f32.mrb[34].mxu0  ;;  %v1073_v53 = vpop.f32.mrb[22].mxu1 }
 0x35c   :  { %1109 = vst [vmem:[#allocation14 + $0x40] sm:$0xff] %v1093_v48  ;;  %1115 = vst [vmem:[#allocation14 + $0x70] sm:$0xff] %v1099_v49  ;;  %v1094_v54 = vadd.f32 %v2047_v10, %v1043_v52  ;;  %v1100_v55 = vadd.f32 %v2047_v10, %v1073_v53  ;;  %v1045_v56 = vpop.f32.mrb[35].mxu0  ;;  %v1075_v57 = vpop.f32.mrb[23].mxu1 }
 0x35d   :  { %v1346_v58 = vpack.c.bf16 %v1045_v56, %v1041_v50  ;;  %v1361_v59 = vpack.c.bf16 %v1075_v57, %v1071_v51 }
 0x35e   :  { %1110 = vst [vmem:[#allocation14 + $0x48] sm:$0xff] %v1094_v54  ;;  %1116 = vst [vmem:[#allocation14 + $0x78] sm:$0xff] %v1100_v55 }
 0x35f   :  { %1366 = vst [vmem:[#allocation15 + $0x20] sm:$0xff] %v1346_v58   ;;  %1369 = vst [vmem:[#allocation15 + $0x38] sm:$0xff] %v1361_v59  }
 0x361   :  { %v1049_v60 = vpop.f32.mrb[36].mxu0 }
 0x362   :  { %v1095_v61 = vadd.f32 %v2047_v10, %v1049_v60  ;;  %v1051_v62 = vpop.f32.mrb[37].mxu0 }
 0x363   :  { %v1053_v63 = vpop.f32.mrb[38].mxu0 }
 0x364   :  { %1111 = vst [vmem:[#allocation14 + $0x50] sm:$0xff] %v1095_v61  ;;  %v1096_v0 = vadd.f32 %v2047_v10, %v1053_v63  ;;  %v1055_v1 = vpop.f32.mrb[39].mxu0 }
 0x365   :  { %v1351_v2 = vpack.c.bf16 %v1055_v1, %v1051_v62 }
 0x366   :  { %1112 = vst [vmem:[#allocation14 + $0x58] sm:$0xff] %v1096_v0 }
 0x367   :  { %1367 = vst [vmem:[#allocation15 + $0x28] sm:$0xff] %v1351_v2  }
 0x368   :  { %1766 = shalt.err (!%p1763_p10)
}
 0x369   :  { %s1767_s27 = scalar_lea.hbm %s2110_s8, 2048 }
 0x36a   :  { %p1768_p11 = scmp.ne.s32.totalorder %s2110_s8, %s1767_s27  ;;  %p1771_p12 = scmp.lt.u32.totalorder %s1767_s27, %s2110_s8 }
 0x36c   :  { %p1773_p13 = pnand %p1771_p12, %p1768_p11 }
 0x36e   :  { %1776 = shalt.err (!%p1773_p13)
}
 0x36f   :  { %1208 = dma.vmem_to_hbm [thread:$0]  %s1203_s23, 2048, %s2110_s8, [#allocation5], %s1819_s4, %s1819_s4, %s1820_s15  }
 0x370   :  { %s1777_s13 = scalar_lea.vmem %s2065_s25, 1024  ;;  %p1782_p1 = scmp.lt.s32.totalorder %s2065_s25, %s2065_s25 }
 0x371   :  { %p1778_p0 = scmp.ne.s32.totalorder %s2065_s25, %s1777_s13  ;;  %p1783_p2 = scmp.lt.s32.totalorder %s1777_s13, %s1777_s13 }
 0x373   :  { %p1784_p3 = por %p1783_p2, %p1782_p1 }
 0x375   :  { %p1785_p4 = pnand %p1784_p3, %p1778_p0 }
 0x377   :  { %1788 = shalt.err (!%p1785_p4)
}
 0x378   :  { %s1789_s14 = scalar_lea.hbm %s2111_s9, 1024 }
 0x379   :  { %p1790_p5 = scmp.ne.s32.totalorder %s2111_s9, %s1789_s14  ;;  %p1793_p6 = scmp.lt.u32.totalorder %s1789_s14, %s2111_s9 }
 0x37b   :  { %p1795_p7 = pnand %p1793_p6, %p1790_p5 }
 0x37d   :  { %1798 = shalt.err (!%p1795_p7)
}
 0x37e   :  { %1220 = dma.vmem_to_hbm [thread:$0]  %s2065_s25, 1024, %s2111_s9, [#allocation16], %s1813_s21, %s1813_s21, %s1814_s22  }
 0x37f   :  { %1807 = dma.done.wait [#allocation5], 2048  }
 0x380   :  { %1808 = vsyncadd [#allocation5], 4294965248 }
 0x381   :  { %1809 = dma.done.wait [#allocation16], 1024  }
 0x382   :  { %1810 = vsyncadd [#allocation16], 4294966272 }
 0x383   :  { %1227 = vsyncpa [#allocation4], 1 }
 0x384   :  { %1228 = vsyncpa [#allocation7], 1 }
 0x385   :  { %1229 = vsyncpa [#allocation10], 1 }
 0x386   :  { %1230 = vsyncpa [#allocation13], 1 }
 0x387   :  { %1231 = vsyncpa [#allocation5], 1 }
 0x388   :  { %1232 = vsyncpa [#allocation16], 1 }

</bundles_post_ra>
